<compile_context>
chip_gen: v7x
topology: tpu7x:2x2x1
jax: 0.10.0
libtpu: 0.0.40
codegen_flags: <defaults>
</compile_context>

<pallas_src>
import math
from functools import partial

import jax
import jax.numpy as jnp
from jax.experimental import pallas as pl
from jax.experimental.pallas import tpu as pltpu

_HALF_LOG_2PI = 0.5 * math.log(2.0 * math.pi)
_LANES = 128


def _gaussian_nll_kernel(mu_ref, std_ref, tgt_ref, out_ref, acc_ref, *,
                         n_total, tile_rows):
    i = pl.program_id(0)

    @pl.when(i == 0)
    def _init():
        acc_ref[...] = jnp.zeros_like(acc_ref)

    mu = mu_ref[...].astype(jnp.float32)
    std = std_ref[...].astype(jnp.float32)
    t = tgt_ref[...].astype(jnp.float32)

    # Normal.log_prob(x) = -(x-mu)^2 / (2*var) - log(std) - 0.5*log(2*pi)
    # TODO(synk): no eps clamp on std (matches torch.distributions.Normal, not GaussianNLLLoss).
    diff = t - mu
    inv_std = pl.reciprocal(std, approx=False)
    z = diff * inv_std
    log_prob = -0.5 * z * z - jnp.log(std) - _HALF_LOG_2PI

    # Mask out padded tail elements (N is a trace-time constant).
    row = jax.lax.broadcasted_iota(jnp.int32, (tile_rows, _LANES), 0)
    lane = jax.lax.broadcasted_iota(jnp.int32, (tile_rows, _LANES), 1)
    flat_idx = (i * tile_rows + row) * _LANES + lane
    log_prob = jnp.where(flat_idx < n_total, log_prob, 0.0)

    # Per-lane running partial sums (sublane reduce only in the hot loop).
    acc_ref[...] += jnp.sum(log_prob, axis=0, keepdims=True)

    @pl.when(i == pl.num_programs(0) - 1)
    def _finalize():
        out_ref[0, 0] = -jnp.sum(acc_ref[...]) * jnp.float32(1.0 / n_total)


def gaussian_nll(inp: jax.Array, target: jax.Array, *,
                 max_tile_rows: int = 512) -> jax.Array:
    """inp: (N, 2) with column 0 = mu, column 1 = std; target: (N,) or (N, 1).

    Returns the scalar -mean(Normal(mu, std).log_prob(target)) as f32.
    `max_tile_rows` (multiple of 8) caps the rows-of-128-lanes per grid step.
    """
    assert inp.ndim == 2 and inp.shape[1] == 2, "input must be (N, 2)"
    n = int(inp.shape[0])

    def _as_float(x):
        return x if jnp.issubdtype(x.dtype, jnp.floating) else x.astype(jnp.float32)

    mu = _as_float(inp[:, 0]).reshape(-1)
    std = _as_float(inp[:, 1]).reshape(-1)
    tgt = _as_float(target).reshape(-1)

    rows = (n + _LANES - 1) // _LANES
    tile_rows = min(max_tile_rows, ((rows + 7) // 8) * 8)
    grid = (rows + tile_rows - 1) // tile_rows
    padded_rows = grid * tile_rows
    pad = padded_rows * _LANES - n

    def prep(x, pad_value):
        x = jnp.pad(x, (0, pad), constant_values=pad_value)
        return x.reshape(padded_rows, _LANES)

    mu_p = prep(mu, 0.0)
    std_p = prep(std, 1.0)   # keeps log()/reciprocal finite in padded lanes (masked anyway)
    tgt_p = prep(tgt, 0.0)

    kernel = partial(_gaussian_nll_kernel, n_total=n, tile_rows=tile_rows)
    block = pl.BlockSpec((tile_rows, _LANES), lambda i: (i, 0))

    out = pl.pallas_call(
        kernel,
        out_shape=jax.ShapeDtypeStruct((1, 1), jnp.float32),
        grid=(grid,),
        in_specs=[block, block, block],
        out_specs=pl.BlockSpec((1, 1), lambda i: (0, 0),
                               memory_space=pltpu.MemorySpace.SMEM),
        scratch_shapes=[pltpu.VMEM((1, _LANES), jnp.float32)],
        compiler_params=pltpu.CompilerParams(
            dimension_semantics=("arbitrary",)),
    )(mu_p, std_p, tgt_p)
    return out[0, 0]


def _reference(inp, target):
    mu = inp[:, 0:1].astype(jnp.float32)
    std = inp[:, 1:2].astype(jnp.float32)
    t = target.reshape(-1, 1).astype(jnp.float32)
    log_prob = (
        -0.5 * (t - mu) ** 2 / (std * std) - jnp.log(std) - _HALF_LOG_2PI
    )
    return -jnp.mean(log_prob)


if __name__ == "__main__":
    # Case 1: small N, single grid step (default 512-row tiles).
    key = jax.random.PRNGKey(0)
    k_mu, k_std, k_tgt = jax.random.split(key, 3)
    N1 = 300
    mu1 = jax.random.normal(k_mu, (N1, 1), dtype=jnp.float32)
    std1 = jnp.abs(jax.random.normal(k_std, (N1, 1), dtype=jnp.float32)) + 0.5
    inp1 = jnp.concatenate([mu1, std1], axis=1)          # (N, 2): [mean, std]
    tgt1 = jax.random.normal(k_tgt, (N1, 1), dtype=jnp.float32)

    out1 = gaussian_nll(inp1, tgt1)
    jax.block_until_ready(out1)
    ref1 = _reference(inp1, tgt1)
    assert jnp.allclose(out1, ref1, rtol=1e-5, atol=1e-5), (out1, ref1)

    # Case 2: force tiny tiles so the multi-step gridded accumulator
    # (init / accumulate / finalize + tail masking) is exercised.
    k_mu2, k_std2, k_tgt2 = jax.random.split(jax.random.PRNGKey(1), 3)
    N2 = 3000
    mu2 = jax.random.normal(k_mu2, (N2, 1), dtype=jnp.float32)
    std2 = jnp.abs(jax.random.normal(k_std2, (N2, 1), dtype=jnp.float32)) + 0.5
    inp2 = jnp.concatenate([mu2, std2], axis=1)
    tgt2 = jax.random.normal(k_tgt2, (N2, 1), dtype=jnp.float32)

    out2 = gaussian_nll(inp2, tgt2, max_tile_rows=8)      # grid of 3 steps
    jax.block_until_ready(out2)
    ref2 = _reference(inp2, tgt2)
    assert jnp.allclose(out2, ref2, rtol=1e-5, atol=1e-5), (out2, ref2)

    print("KERNEL_OK")
</pallas_src>

<mosaic_0001>
module attributes {stable_mosaic.version = 11 : i64} {
  func.func @_gaussian_nll_kernel(%arg0: i32, %arg1: memref<8x128xf32, #tpu.memory_space<vmem>>, %arg2: memref<8x128xf32, #tpu.memory_space<vmem>>, %arg3: memref<8x128xf32, #tpu.memory_space<vmem>>, %arg4: memref<1x1xf32, #tpu.memory_space<smem>>, %arg5: memref<1x128xf32, #tpu.memory_space<vmem>>) attributes {dimension_semantics = [#tpu.dimension_semantics<arbitrary>], iteration_bounds = array<i64: 1>, scalar_prefetch = 0 : i64, scratch_operands = 1 : i64, tpu.core_type = #tpu.core_type<tc>, window_params = [{transform_indices = @transform_0, window_bounds = array<i64: 8, 128>}, {transform_indices = @transform_1, window_bounds = array<i64: 8, 128>}, {transform_indices = @transform_2, window_bounds = array<i64: 8, 128>}, {transform_indices = @transform_3, window_bounds = array<i64: 1, 1>}]} {
    %c0_i32 = arith.constant 0 : i32
    %0 = arith.cmpi eq, %arg0, %c0_i32 : i32
    %1 = arith.extui %0 : i1 to i32
    %c0_i32_0 = arith.constant 0 : i32
    %2 = arith.cmpi ne, %1, %c0_i32_0 : i32
    scf.if %2 {
      %cst_15 = arith.constant 0.000000e+00 : f32
      %36 = vector.broadcast %cst_15 : f32 to vector<1x128xf32>
      %c0_16 = arith.constant 0 : index
      %c0_17 = arith.constant 0 : index
      %37 = vector.load %arg5[%c0_16, %c0_17] : memref<1x128xf32, #tpu.memory_space<vmem>>, vector<1x128xf32>
      tpu.vector_store %arg5[%c0_16, %c0_17], %36 {strides = array<i32>} : memref<1x128xf32, #tpu.memory_space<vmem>>, vector<1x128xf32>,
    } else {
    }
    %c0 = arith.constant 0 : index
    %c0_1 = arith.constant 0 : index
    %3 = vector.load %arg1[%c0, %c0_1] : memref<8x128xf32, #tpu.memory_space<vmem>>, vector<8x128xf32>
    %c0_2 = arith.constant 0 : index
    %c0_3 = arith.constant 0 : index
    %4 = vector.load %arg2[%c0_2, %c0_3] : memref<8x128xf32, #tpu.memory_space<vmem>>, vector<8x128xf32>
    %c0_4 = arith.constant 0 : index
    %c0_5 = arith.constant 0 : index
    %5 = vector.load %arg3[%c0_4, %c0_5] : memref<8x128xf32, #tpu.memory_space<vmem>>, vector<8x128xf32>
    %6 = arith.subf %5, %3 : vector<8x128xf32>
    %7 = tpu.reciprocal %4 : vector<8x128xf32> -> vector<8x128xf32>
    %8 = arith.mulf %6, %7 : vector<8x128xf32>
    %cst = arith.constant -5.000000e-01 : f32
    %9 = vector.broadcast %cst : f32 to vector<8x128xf32>
    %10 = arith.mulf %9, %8 : vector<8x128xf32>
    %11 = arith.mulf %10, %8 : vector<8x128xf32>
    %12 = math.log %4 : vector<8x128xf32>
    %13 = arith.subf %11, %12 : vector<8x128xf32>
    %cst_6 = arith.constant 0.918938517 : f32
    %14 = vector.broadcast %cst_6 : f32 to vector<8x128xf32>
    %15 = arith.subf %13, %14 : vector<8x128xf32>
    %16 = tpu.iota {dimensions = array<i32: 0>} : vector<8x128xi32>
    %17 = tpu.iota {dimensions = array<i32: 1>} : vector<8x128xi32>
    %c8_i32 = arith.constant 8 : i32
    %18 = arith.muli %arg0, %c8_i32 : i32
    %19 = vector.broadcast %18 : i32 to vector<8x128xi32>
    %20 = arith.addi %19, %16 : vector<8x128xi32>
    %c128_i32 = arith.constant 128 : i32
    %21 = vector.broadcast %c128_i32 : i32 to vector<8x128xi32>
    %22 = arith.muli %20, %21 : vector<8x128xi32>
    %23 = arith.addi %22, %17 : vector<8x128xi32>
    %c300_i32 = arith.constant 300 : i32
    %24 = vector.broadcast %c300_i32 : i32 to vector<8x128xi32>
    %25 = arith.cmpi slt, %23, %24 : vector<8x128xi32>
    %cst_7 = arith.constant 0.000000e+00 : f32
    %26 = vector.broadcast %cst_7 : f32 to vector<8x128xf32>
    %27 = arith.select %25, %15, %26 : vector<8x128xi1>, vector<8x128xf32>
    %c0_8 = arith.constant 0 : index
    %c0_9 = arith.constant 0 : index
    %28 = vector.load %arg5[%c0_8, %c0_9] : memref<1x128xf32, #tpu.memory_space<vmem>>, vector<1x128xf32>
    %cst_10 = arith.constant dense<0.000000e+00> : vector<128xf32>
    %29 = vector.multi_reduction <add>, %27, %cst_10 [0] : vector<8x128xf32> to vector<128xf32>
    %30 = vector.shape_cast %29 : vector<128xf32> to vector<1x128xf32>
    %31 = arith.addf %28, %30 : vector<1x128xf32>
    %c0_11 = arith.constant 0 : index
    %c0_12 = arith.constant 0 : index
    %32 = vector.load %arg5[%c0_11, %c0_12] : memref<1x128xf32, #tpu.memory_space<vmem>>, vector<1x128xf32>
    tpu.vector_store %arg5[%c0_11, %c0_12], %31 {strides = array<i32>} : memref<1x128xf32, #tpu.memory_space<vmem>>, vector<1x128xf32>,
    %c0_i32_13 = arith.constant 0 : i32
    %33 = arith.cmpi eq, %arg0, %c0_i32_13 : i32
    %34 = arith.extui %33 : i1 to i32
    %c0_i32_14 = arith.constant 0 : i32
    %35 = arith.cmpi ne, %34, %c0_i32_14 : i32
    scf.if %35 {
      %c0_15 = arith.constant 0 : index
      %c0_16 = arith.constant 0 : index
      %36 = vector.load %arg5[%c0_15, %c0_16] : memref<1x128xf32, #tpu.memory_space<vmem>>, vector<1x128xf32>
      %37 = vector.shape_cast %36 : vector<1x128xf32> to vector<1x1x128xf32>
      %cst_17 = arith.constant dense<0.000000e+00> : vector<1xf32>
      %38 = vector.multi_reduction <add>, %37, %cst_17 [1, 2] : vector<1x1x128xf32> to vector<1xf32>
      %39 = vector.shape_cast %38 : vector<1xf32> to vector<1x1x1xf32>
      %40 = vector.extract %39[0, 0, 0] : f32 from vector<1x1x1xf32>
      %cst_18 = arith.constant 0.000000e+00 : f32
      %41 = arith.subf %cst_18, %40 : f32
      %cst_19 = arith.constant 0.00333333341 : f32
      %42 = arith.mulf %41, %cst_19 : f32
      %c0_20 = arith.constant 0 : index
      %c0_21 = arith.constant 0 : index
      %43 = memref.load %arg4[%c0_20, %c0_21] : memref<1x1xf32, #tpu.memory_space<smem>>
      memref.store %42, %arg4[%c0_20, %c0_21] : memref<1x1xf32, #tpu.memory_space<smem>>
    } else {
    }
    return
  }
  func.func @transform_0(%arg0: i32) -> (i32, i32) {
    %c0_i32 = arith.constant 0 : i32
    %c0_i32_0 = arith.constant 0 : i32
    return %arg0, %c0_i32 : i32, i32
  }
  func.func @transform_1(%arg0: i32) -> (i32, i32) {
    %c0_i32 = arith.constant 0 : i32
    %c0_i32_0 = arith.constant 0 : i32
    return %arg0, %c0_i32 : i32, i32
  }
  func.func @transform_2(%arg0: i32) -> (i32, i32) {
    %c0_i32 = arith.constant 0 : i32
    %c0_i32_0 = arith.constant 0 : i32
    return %arg0, %c0_i32 : i32, i32
  }
  func.func @transform_3(%arg0: i32) -> (i32, i32) {
    %c0_i32 = arith.constant 0 : i32
    %c0_i32_0 = arith.constant 0 : i32
    %c0_i32_1 = arith.constant 0 : i32
    return %c0_i32, %c0_i32_0 : i32, i32
  }
}

</mosaic_0001>

<bundles_post_ra>
// kernel: tpu_custom_call.1
= control target key start
LH: loop header
LB: loop body
LE: loop exit
PB: predicated region body
PF: predicated region fallthrough
CT: control target
= control target key end

     0   :  { %8 = vsyncpa [#allocation4], 0  ;;  %s288_s0 = inlined_call_operand.hbm [shape: f32[8,128], index: 0, kind: input, shape index: {}]   ;;  %s289_s1 = inlined_call_operand.hbm [shape: f32[8,128], index: 1, kind: input, shape index: {}]   ;;  %s290_s2 = inlined_call_operand.hbm [shape: f32[8,128], index: 2, kind: input, shape index: {}]   ;;  %s291_s3 = inlined_call_operand.hbm [shape: f32[1,1], index: 3, kind: output, shape index: {}]  }
   0x1   :  { %9 = vsyncpa [#allocation7], 0 }
   0x2   :  { %10 = vsyncpa [#allocation5], 0  ;;  %s215_s12 = smov [#allocation6]   ;;  %s216_s14 = smov [#allocation3]  }
   0x3   :  { %s27_s13 = sshll.u32 %s215_s12, 4  ;;  %s17_s15 = sshll.u32 %s216_s14, 4  ;;  %s28_s13 = int_to_ptr.vmem [resolvable:$true] %s27_s13  ;;  %s18_s15 = int_to_ptr.vmem [resolvable:$true] %s17_s15 }
   0x4   :  { %s133_s18 = scalar_lea.hbm %s289_s1, 128 }
   0x5   :  { %p134_p0 = scmp.ne.s32.totalorder %s289_s1, %s133_s18  ;;  %p137_p1 = scmp.lt.u32.totalorder %s133_s18, %s289_s1 }
   0x7   :  { %p139_p2 = pnand %p137_p1, %p134_p0 }
   0x9   :  { %142 = shalt.err (!%p139_p2)
}
   0xa   :  { %s143_s23 = scalar_lea.vmem %s28_s13, 128  ;;  %p148_p4 = scmp.lt.s32.totalorder %s28_s13, %s28_s13 }
   0xb   :  { %p144_p3 = scmp.ne.s32.totalorder %s28_s13, %s143_s23  ;;  %p149_p5 = scmp.lt.s32.totalorder %s143_s23, %s143_s23 }
   0xd   :  { %p150_p6 = por %p149_p5, %p148_p4 }
   0xf   :  { %p151_p7 = pnand %p150_p6, %p144_p3 }
  0x11   :  { %154 = shalt.err (!%p151_p7)
}
  0x12   :  { %30 = dma.hbm_to_vmem [thread:$0]  %s289_s1, 128, %s28_s13, [#allocation7]  }
  0x13   :  { %s155_s28 = scalar_lea.hbm %s288_s0, 128 }
  0x14   :  { %p156_p8 = scmp.ne.s32.totalorder %s288_s0, %s155_s28  ;;  %p159_p9 = scmp.lt.u32.totalorder %s155_s28, %s288_s0 }
  0x16   :  { %p161_p10 = pnand %p159_p9, %p156_p8 }
  0x18   :  { %164 = shalt.err (!%p161_p10)
}
  0x19   :  { %s165_s6 = scalar_lea.vmem %s18_s15, 128  ;;  %p170_p12 = scmp.lt.s32.totalorder %s18_s15, %s18_s15 }
  0x1a   :  { %p166_p11 = scmp.ne.s32.totalorder %s18_s15, %s165_s6  ;;  %p171_p13 = scmp.lt.s32.totalorder %s165_s6, %s165_s6 }
  0x1c   :  { %p172_p0 = por %p171_p13, %p170_p12 }
  0x1e   :  { %p173_p1 = pnand %p172_p0, %p166_p11 }
  0x20   :  { %176 = shalt.err (!%p173_p1)
}
  0x21   :  { %20 = dma.hbm_to_vmem [thread:$0]  %s288_s0, 128, %s18_s15, [#allocation4]  }
  0x22   :  { %s217_s8 = smov [#allocation8]   ;;  %s177_s12 = scalar_lea.hbm %s290_s2, 128 }
  0x23   :  { %s37_s9 = sshll.u32 %s217_s8, 4  ;;  %p178_p2 = scmp.ne.s32.totalorder %s290_s2, %s177_s12  ;;  %s38_s9 = int_to_ptr.vmem [resolvable:$true] %s37_s9 }
  0x24   :  { %p181_p3 = scmp.lt.u32.totalorder %s177_s12, %s290_s2 }
  0x26   :  { %p183_p4 = pnand %p181_p3, %p178_p2 }
  0x28   :  { %186 = shalt.err (!%p183_p4)
}
  0x29   :  { %s187_s18 = scalar_lea.vmem %s38_s9, 128  ;;  %p192_p6 = scmp.lt.s32.totalorder %s38_s9, %s38_s9 }
  0x2a   :  { %p188_p5 = scmp.ne.s32.totalorder %s38_s9, %s187_s18  ;;  %p193_p7 = scmp.lt.s32.totalorder %s187_s18, %s187_s18 }
  0x2c   :  { %p194_p8 = por %p193_p7, %p192_p6 }
  0x2e   :  { %p195_p9 = pnand %p194_p8, %p188_p5 }
  0x30   :  { %198 = shalt.err (!%p195_p9)
}
  0x31   :  { %40 = dma.hbm_to_vmem [thread:$0]  %s290_s2, 128, %s38_s9, [#allocation7]  }
  0x32   :  { %209 = dma.done.wait [#allocation4], 128  }
  0x33   :  { %210 = vsyncadd [#allocation4], 4294967168 }
  0x34   :  { %211 = dma.done.wait [#allocation7], 256  }
  0x35   :  { %212 = vsyncadd [#allocation7], 4294967040  ;;  %v218_v0 = vmov 0.0   ;;  %v56_v1 = vld [vmem:[#allocation6] sm:$0xff]  ;;  %v67_v2 = vlaneseq  ;;  %v55_v3 = vld [vmem:[#allocation3] sm:$0xff]  ;;  %vm91_vm1 = vcmask 1040384  }
  0x36   :  { %54 = vst [vmem:[#allocation2] sm:$0x1] %v218_v0  ;;  %129 = vrcp.f32 %v56_v1  ;;  %v57_v4 = vld [vmem:[#allocation8] sm:$0xff]  ;;  %s199_s23 = scalar_lea.hbm %s291_s3, 16 }
  0x37   :  { %131 = vlog2.f32 %v56_v1  ;;  %v68_v5 = vshrl.u32 %v67_v2, 7  ;;  %v58_v6 = vsub.f32 %v57_v4, %v55_v3  ;;  %v70_v8 = vand.u32 127, %v67_v2  ;;  %p200_p10 = scmp.ne.s32.totalorder %s291_s3, %s199_s23  ;;  %p203_p11 = scmp.lt.u32.totalorder %s199_s23, %s291_s3 }
  0x39   :  { %v74_v9 = vmul.u32 128, %v68_v5  ;;  %p205_p12 = pnand %p203_p11, %p200_p10 }
  0x3b   :  { %v75_v14 = vadd.s32 %v74_v9, %v70_v8 }
  0x3d   :  { %vm76_vm0 = vcmp.lt.s32.totalorder %v75_v14, 300  ;;  %v78_v24 = vld [vmem:[#allocation2] sm:$0x1] }
  0x40   :  { %v130_v7 = vpop.eup %129 }
  0x41   :  { %v132_v10 = vpop.eup %131  ;;  %v60_v11 = vmul.f32 %v130_v7, %v58_v6 }
  0x42   :  { %v64_v13 = vmul.f32 0.6931472, %v132_v10 }
  0x43   :  { %v61_v12 = vmul.f32 -0.5, %v60_v11 }
  0x45   :  { %v62_v15 = vmul.f32 %v61_v12, %v60_v11 }
  0x47   :  { %v65_v16 = vsub.f32 %v62_v15, %v64_v13 }
  0x49   :  { %v121_v17 = vadd.f32 -0.9189385, %v65_v16 }
  0x4b   :  { %v77_v18 = vsel %vm76_vm0, %v121_v17, 0.0 }
  0x4c   :  { %v79_v19 = vrot.slane %v77_v18, 4 }
  0x4e   :  { %v80_v20 = vadd.f32 %v79_v19, %v77_v18 }
  0x50   :  { %v81_v21 = vrot.slane %v80_v20, 2 }
  0x52   :  { %v82_v22 = vadd.f32 %v81_v21, %v80_v20 }
  0x54   :  { %v83_v23 = vrot.slane %v82_v22, 1 }
  0x56   :  { %v84_v25 = vadd.f32 %v83_v23, %v82_v22 }
  0x58   :  { %v85_v26 = vadd.f32 %v84_v25, %v78_v24 }
  0x5a   :  { %86 = vst [vmem:[#allocation2] sm:$0x1] %v85_v26 }
  0x61   :  { %v90_v27 = vld [vmem:[#allocation2] sm:$0x1] }
  0x62   :  { %v92_v28 = vsel %vm91_vm1, %v90_v27, 0.0 }
  0x63   :  { %93 = vadd.xlane.f32.xlu0 %v92_v28 }
  0xf0   :  { %v94_v29 = vpop.xlane.xlu0 %93 }
  0xf1   :  { %v95_v30 = vrot.slane %v94_v29, 4 }
  0xf3   :  { %v96_v31 = vadd.f32 %v95_v30, %v94_v29 }
  0xf5   :  { %v97_v32 = vrot.slane %v96_v31, 2 }
  0xf7   :  { %v98_v33 = vadd.f32 %v97_v32, %v96_v31 }
  0xf9   :  { %v99_v34 = vrot.slane %v98_v33, 1 }
  0xfb   :  { %v100_v35 = vadd.f32 %v99_v34, %v98_v33 }
  0xfd   :  { %122 = vpush %v100_v35 }
 0x12e   :  { %s123_s2 = spop %122 }
 0x12f   :  { %s102_s19 = ssub.f32 0.0, %s123_s2 }
 0x131   :  { %s103_s20 = smul.f32 0.0033333334, %s102_s19 }
 0x133   :  { %105 = sst [smem:[#allocation9]] %s103_s20 }
 0x134   :  { %208 = shalt.err (!%p205_p12)
}
 0x135   :  { %s219_s28 = smov [#allocation9]  }
 0x136   :  { %113 = dma.smem_to_hbm %s219_s28, 16, %s291_s3, [#allocation5]  }
 0x137   :  { %213 = dma.done.wait [#allocation5], 16  }
 0x138   :  { %214 = vsyncadd [#allocation5], 4294967280 }
 0x139   :  { %117 = sfence }
 0x13a   :  { %118 = vsyncpa [#allocation4], 1 }
 0x13b   :  { %119 = vsyncpa [#allocation7], 1 }
 0x13c   :  { %120 = vsyncpa [#allocation5], 1 }

</bundles_post_ra>
